<compile_context>
chip_gen: v5e
topology: v5e:2x2
jax: 0.10.0
libtpu: 0.0.40
codegen_flags: <defaults>
</compile_context>

<pallas_src>
from typing import List, Union

import jax
import jax.numpy as jnp
from jax.experimental import pallas as pl
from jax.experimental.pallas import tpu as pltpu

LANE = 128      # vreg lane width (batch axis in this layout)
SUBLANE = 8     # vreg sublane count for f32 (feature axis in this layout)


def _round_up(v: int, m: int) -> int:
    return (v + m - 1) // m * m


# --------------------------------------------------------------------------- kernel

def _make_mlp_kernel(num_hidden_layers: int):
    """Fused MLP body, transposed layout: activations are (features, batch)."""
    num_linear = num_hidden_layers + 1

    def kernel(*refs):
        # refs = (x_ref, w0_t, b0, w1_t, b1, ..., out_ref)
        x_ref = refs[0]
        out_ref = refs[-1]
        param_refs = refs[1:-1]

        h = x_ref[...]                                   # (in_p, tile_n) f32
        for i in range(num_linear):
            w_t = param_refs[2 * i][...]                 # (out_p_i, in_p_i)  f32
            b = param_refs[2 * i + 1][...]               # (out_p_i, 1)       f32
            # MXU matmul, f32 accumulation; bias broadcast along the lane (batch) axis.
            h = jnp.dot(w_t, h, preferred_element_type=jnp.float32) + b
            if i < num_hidden_layers:
                h = jnp.maximum(h, 0.0)
                # TODO(synk): nn.Dropout(p) in training mode (pltpu.prng_random_bits
                # mask + 1/(1-p) rescale) is omitted; this kernel implements the
                # deterministic eval-mode forward (Dropout = identity).
        out_ref[...] = h.astype(out_ref.dtype)

    return kernel


# --------------------------------------------------------------------------- sizing

def _vmem_budget_bytes() -> int:
    """Per-generation VMEM budget used both for tile sizing and as vmem_limit_bytes."""
    try:
        cap = int(pltpu.get_tpu_info().vmem_capacity_bytes)
    except Exception:
        cap = 64 << 20          # conservative (v7x-sized) fallback
    # ~half of physical, capped: 48 MiB on 128 MiB parts (v5e/v6e), 32 MiB on v7x.
    return max(16 << 20, min(cap // 2, 48 << 20))


def _pick_tile_cols(n_cols: int, in_p: int, out_p: int, max_w: int,
                    requested: int, budget: int, param_bytes: int) -> int:
    """Lane-aligned batch-column tile sized against the VMEM budget.

    Counts double-buffered input + output blocks plus ~3 live full-width
    intermediates per column; resident weights are subtracted from the budget.
    """
    per_col = 4 * (2 * in_p + 2 * out_p + 3 * max_w)      # f32 bytes per batch column
    avail = max(budget - param_bytes - (1 << 20), per_col * LANE)
    cap = max(LANE, (avail // per_col) // LANE * LANE)
    tile = max(LANE, min(_round_up(requested, LANE), cap, n_cols))
    # v7x megacore: ensure the "parallel" batch grid has >= 2 steps whenever there is
    # enough work so both TensorCores get a share (no-op on single-TC v5e/v6e).
    if n_cols >= 2 * LANE and pl.cdiv(n_cols, tile) < 2:
        tile = _round_up(pl.cdiv(n_cols, 2), LANE)
    return tile


# --------------------------------------------------------------------------- wrapper

def sta_paras_mlp_forward(x: jnp.ndarray, params, *, tile_n: int = 32768) -> jnp.ndarray:
    """Forward pass of StaParasMLP.

    x:      (N, L, F) float32
    params: list of (W, b) with W: (in, out), b: (out,)   [W stored transposed vs torch]
    returns (N, outSz) float32
    """
    n = x.shape[0]
    out_sz = params[-1][0].shape[1]
    num_hidden = len(params) - 1

    # --- single wrapper relayout: last timestep, static attrs, transposed to
    #     (features, batch) and zero-padded to (sublane, lane) multiples. Exact. ---
    x_t = jnp.transpose(x[:, -1, 4:])                     # (in_feats, N)
    in_feats = x_t.shape[0]
    in_p = _round_up(in_feats, SUBLANE)
    n_lane = _round_up(max(n, 1), LANE)
    x_t = jnp.pad(x_t, ((0, in_p - in_feats), (0, n_lane - n)))

    # --- transpose / pad params: per layer W^T (out_p, in_p_prev), b (out_p, 1).
    #     Zero padding is exact (extra contraction terms are exactly 0.0). ---
    flat_inputs = [x_t]
    param_shapes = []
    prev_p = in_p
    for (w, b) in params:
        in_dim, out_dim = w.shape
        out_p = _round_up(out_dim, SUBLANE)
        w_t = jnp.pad(jnp.transpose(w), ((0, out_p - out_dim), (0, prev_p - in_dim)))
        b_p = jnp.pad(b, (0, out_p - out_dim)).reshape(out_p, 1)
        flat_inputs += [w_t, b_p]
        param_shapes.append((w_t.shape, b_p.shape))
        prev_p = out_p
    out_p = prev_p
    max_w = max(in_p, max(ws[0] for (ws, _) in param_shapes))
    param_bytes = 4 * sum(int(a.size) for a in flat_inputs[1:])

    # --- batch grid: large lane-aligned column tiles, weights resident in VMEM ---
    budget = _vmem_budget_bytes()
    tile = _pick_tile_cols(n_lane, in_p, out_p, max_w, tile_n, budget, param_bytes)
    grid = (pl.cdiv(n_lane, tile),)

    in_specs = [pl.BlockSpec((in_p, tile), lambda i: (0, i))]
    for (w_shape, b_shape) in param_shapes:
        # Constant index_map => DMAed once, stays resident across all grid steps.
        in_specs.append(pl.BlockSpec(w_shape, lambda i: (0, 0)))
        in_specs.append(pl.BlockSpec(b_shape, lambda i: (0, 0)))
    out_spec = pl.BlockSpec((out_p, tile), lambda i: (0, i))

    kernel = _make_mlp_kernel(num_hidden)

    flops = 2 * n * sum(int(w.shape[0]) * int(w.shape[1]) for (w, _) in params)
    bytes_accessed = 4 * (in_p + out_p) * n_lane + param_bytes
    cost = pl.CostEstimate(flops=int(flops), transcendentals=0,
                           bytes_accessed=int(bytes_accessed))

    out_t = pl.pallas_call(
        kernel,
        out_shape=jax.ShapeDtypeStruct((out_p, n_lane), jnp.float32),
        grid_spec=pltpu.PrefetchScalarGridSpec(
            num_scalar_prefetch=0,
            grid=grid,
            in_specs=in_specs,
            out_specs=out_spec,
        ),
        compiler_params=pltpu.CompilerParams(
            dimension_semantics=("parallel",),
            vmem_limit_bytes=int(budget)),
        cost_estimate=cost,
    )(*flat_inputs)

    # Back to the module's (N, outSz) convention; tiny relayout on a (out_p, N) slab.
    return jnp.transpose(out_t[:out_sz, :n])


# --------------------------------------------------------------------------- helpers

def init_params(key, in_sz: int, hid_sz: Union[int, List[int]], out_sz: int):
    """Deterministic synthetic init matching nn.Linear shapes (stored transposed)."""
    if isinstance(hid_sz, int):
        hid_sz = [hid_sz]
    sizes = [in_sz] + list(hid_sz) + [out_sz]
    params = []
    for i in range(len(sizes) - 1):
        key, kw, kb = jax.random.split(key, 3)
        bound = 1.0 / (sizes[i] ** 0.5)
        w = jax.random.uniform(kw, (sizes[i], sizes[i + 1]), jnp.float32, -bound, bound)
        b = jax.random.uniform(kb, (sizes[i + 1],), jnp.float32, -bound, bound)
        params.append((w, b))
    return params


def reference_forward(x, params):
    """Pure-JAX reference for a sanity check (eval-mode Dropout = identity)."""
    h = x[:, -1, 4:]
    for i, (w, b) in enumerate(params):
        h = h @ w + b
        if i < len(params) - 1:
            h = jnp.maximum(h, 0.0)
    return h


if __name__ == "__main__":
    # Small shapes consistent with the module's forward:
    #   x: (N=2, L=8, F=12) -> static attrs (N, F-4=8); hidSz=32; outSz=4
    N, L, F = 2, 8, 12
    IN_SZ, HID_SZ, OUT_SZ = F - 4, 32, 4

    key = jax.random.PRNGKey(0)
    kx, kp, kx2 = jax.random.split(key, 3)
    x = jax.random.normal(kx, (N, L, F), dtype=jnp.float32)
    params = init_params(kp, IN_SZ, HID_SZ, OUT_SZ)

    # 1) Toy batch (single grid step): exact match against the pure-JAX reference.
    out = jax.block_until_ready(sta_paras_mlp_forward(x, params))
    ref = reference_forward(x, params)
    assert out.shape == (N, OUT_SZ), out.shape
    assert jnp.allclose(out, ref, atol=1e-5, rtol=1e-5), (out, ref)

    # 2) Larger batch with a forced small tile: exercises the multi-step pipelined
    #    batch grid (3 lane-dense steps) that the real workload would use.
    N_BIG = 300
    x_big = jax.random.normal(kx2, (N_BIG, L, F), dtype=jnp.float32)
    out_big = jax.block_until_ready(sta_paras_mlp_forward(x_big, params, tile_n=128))
    ref_big = reference_forward(x_big, params)
    assert out_big.shape == (N_BIG, OUT_SZ), out_big.shape
    assert jnp.allclose(out_big, ref_big, atol=1e-5, rtol=1e-5)

    # 3) Default tile path: triggers the >=2-grid-step (v7x megacore) rule and a
    #    partial trailing block; per-column independence keeps it exact.
    out_def = jax.block_until_ready(sta_paras_mlp_forward(x_big, params))
    assert out_def.shape == (N_BIG, OUT_SZ), out_def.shape
    assert jnp.allclose(out_def, ref_big, atol=1e-5, rtol=1e-5)

    print("KERNEL_OK")
</pallas_src>

<mosaic_0001>
module attributes {stable_mosaic.version = 11 : i64} {
  func.func @kernel(%arg0: i32, %arg1: memref<8x128xf32, #tpu.memory_space<vmem>>, %arg2: memref<32x8xf32, #tpu.memory_space<vmem>>, %arg3: memref<32x1xf32, #tpu.memory_space<vmem>>, %arg4: memref<8x32xf32, #tpu.memory_space<vmem>>, %arg5: memref<8x1xf32, #tpu.memory_space<vmem>>, %arg6: memref<8x128xf32, #tpu.memory_space<vmem>>) attributes {dimension_semantics = [#tpu.dimension_semantics<parallel>], iteration_bounds = array<i64: 1>, scalar_prefetch = 0 : i64, scratch_operands = 0 : i64, tpu.core_type = #tpu.core_type<tc>, window_params = [{transform_indices = @transform_0, window_bounds = array<i64: 8, 128>}, {pipeline_mode = #tpu.pipeline_mode<synchronous>, transform_indices = @transform_1, window_bounds = array<i64: 32, 8>}, {pipeline_mode = #tpu.pipeline_mode<synchronous>, transform_indices = @transform_2, window_bounds = array<i64: 32, 1>}, {pipeline_mode = #tpu.pipeline_mode<synchronous>, transform_indices = @transform_3, window_bounds = array<i64: 8, 32>}, {pipeline_mode = #tpu.pipeline_mode<synchronous>, transform_indices = @transform_4, window_bounds = array<i64: 8, 1>}, {transform_indices = @transform_5, window_bounds = array<i64: 8, 128>}]} {
    %c0 = arith.constant 0 : index
    %c0_0 = arith.constant 0 : index
    %0 = vector.load %arg1[%c0, %c0_0] : memref<8x128xf32, #tpu.memory_space<vmem>>, vector<8x128xf32>
    %c0_1 = arith.constant 0 : index
    %c0_2 = arith.constant 0 : index
    %1 = vector.load %arg2[%c0_1, %c0_2] : memref<32x8xf32, #tpu.memory_space<vmem>>, vector<32x8xf32>
    %c0_3 = arith.constant 0 : index
    %c0_4 = arith.constant 0 : index
    %2 = vector.load %arg3[%c0_3, %c0_4] : memref<32x1xf32, #tpu.memory_space<vmem>>, vector<32x1xf32>
    %cst = arith.constant dense<0.000000e+00> : vector<32x128xf32>
    %3 = tpu.matmul %1, %0, %cst {dimension_numbers = #tpu.dot_dimension_numbers<[1], [0], [0], [1], [0, 0, 1, 1], [], []>} : vector<32x8xf32>, vector<8x128xf32>, vector<32x128xf32> -> vector<32x128xf32>
    %4 = vector.broadcast %2 : vector<32x1xf32> to vector<32x128xf32>
    %5 = arith.addf %3, %4 : vector<32x128xf32>
    %cst_5 = arith.constant 0.000000e+00 : f32
    %6 = vector.broadcast %cst_5 : f32 to vector<32x128xf32>
    %7 = arith.maximumf %5, %6 : vector<32x128xf32>
    %c0_6 = arith.constant 0 : index
    %c0_7 = arith.constant 0 : index
    %8 = vector.load %arg4[%c0_6, %c0_7] : memref<8x32xf32, #tpu.memory_space<vmem>>, vector<8x32xf32>
    %c0_8 = arith.constant 0 : index
    %c0_9 = arith.constant 0 : index
    %9 = vector.load %arg5[%c0_8, %c0_9] : memref<8x1xf32, #tpu.memory_space<vmem>>, vector<8x1xf32>
    %cst_10 = arith.constant dense<0.000000e+00> : vector<8x128xf32>
    %10 = tpu.matmul %8, %7, %cst_10 {dimension_numbers = #tpu.dot_dimension_numbers<[1], [0], [0], [1], [0, 0, 1, 1], [], []>} : vector<8x32xf32>, vector<32x128xf32>, vector<8x128xf32> -> vector<8x128xf32>
    %11 = vector.broadcast %9 : vector<8x1xf32> to vector<8x128xf32>
    %12 = arith.addf %10, %11 : vector<8x128xf32>
    %c0_11 = arith.constant 0 : index
    %c0_12 = arith.constant 0 : index
    %13 = vector.load %arg6[%c0_11, %c0_12] : memref<8x128xf32, #tpu.memory_space<vmem>>, vector<8x128xf32>
    tpu.vector_store %arg6[%c0_11, %c0_12], %12 {strides = array<i32>} : memref<8x128xf32, #tpu.memory_space<vmem>>, vector<8x128xf32>,
    return
  }
  func.func @transform_0(%arg0: i32) -> (i32, i32) {
    %c0_i32 = arith.constant 0 : i32
    %c0_i32_0 = arith.constant 0 : i32
    return %c0_i32, %arg0 : i32, i32
  }
  func.func @transform_1(%arg0: i32) -> (i32, i32) {
    %c0_i32 = arith.constant 0 : i32
    %c0_i32_0 = arith.constant 0 : i32
    %c0_i32_1 = arith.constant 0 : i32
    return %c0_i32, %c0_i32_0 : i32, i32
  }
  func.func @transform_2(%arg0: i32) -> (i32, i32) {
    %c0_i32 = arith.constant 0 : i32
    %c0_i32_0 = arith.constant 0 : i32
    %c0_i32_1 = arith.constant 0 : i32
    return %c0_i32, %c0_i32_0 : i32, i32
  }
  func.func @transform_3(%arg0: i32) -> (i32, i32) {
    %c0_i32 = arith.constant 0 : i32
    %c0_i32_0 = arith.constant 0 : i32
    %c0_i32_1 = arith.constant 0 : i32
    return %c0_i32, %c0_i32_0 : i32, i32
  }
  func.func @transform_4(%arg0: i32) -> (i32, i32) {
    %c0_i32 = arith.constant 0 : i32
    %c0_i32_0 = arith.constant 0 : i32
    %c0_i32_1 = arith.constant 0 : i32
    return %c0_i32, %c0_i32_0 : i32, i32
  }
  func.func @transform_5(%arg0: i32) -> (i32, i32) {
    %c0_i32 = arith.constant 0 : i32
    %c0_i32_0 = arith.constant 0 : i32
    return %c0_i32, %arg0 : i32, i32
  }
}

</mosaic_0001>

<bundles_post_ra>
// kernel: tpu_custom_call.1
= control target key start
LH: loop header
LB: loop body
LE: loop exit
PB: predicated region body
PF: predicated region fallthrough
CT: control target
= control target key end

     0   :  { %vm50_vm0 = vcmask 64512   ;;  %v182_v5 = vmov 0   ;;  %s254_s0 = inlined_call_operand.vmem [shape: f32[8,128], index: 0, kind: input, shape index: {}]   ;;  %s255_s1 = inlined_call_operand.vmem [shape: f32[32,8], index: 1, kind: input, shape index: {}]   ;;  %s256_s2 = inlined_call_operand.vmem [shape: f32[32,1], index: 2, kind: input, shape index: {}]   ;;  %s257_s3 = inlined_call_operand.vmem [shape: f32[8,32], index: 3, kind: input, shape index: {}]   ;;  %s258_s4 = inlined_call_operand.vmem [shape: f32[8,1], index: 4, kind: input, shape index: {}]   ;;  %s259_s5 = inlined_call_operand.hbm [shape: f32[8,128], index: 5, kind: output, shape index: {}]  }
   0x1   :  { %v21_v0 = vld [vmem:[%s254_s0] sm:$0xff]  ;;  %v23_v1 = vld [vmem:[%s255_s1 + $0x8] sm:$0xff]  ;;  %v25_v2 = vld [vmem:[%s255_s1 + $0x18] sm:$0xff]  ;;  %153 = vset.pattern.permute.xlu0 %v182_v5 }
   0x2   :  { %149 = vmatpush.msra.mxu2 %v21_v0  ;;  %150 = vmatpush.msra.mxu3 %v21_v0  ;;  %v29_v3 = vld [vmem:[%s256_s2 + $0x18] sm:$0xff]  ;;  %v22_v4 = vld [vmem:[%s255_s1] sm:$0xff]  ;;  %v27_v6 = vld [vmem:[%s256_s2 + $0x8] sm:$0xff] }
   0x3   :  { %145 = vmatmul.msk.f32.vlgmr.msra.gmra.mxu2 %vm50_vm0, %v23_v1  ;;  %147 = vmatmul.msk.f32.vlgmr.msra.gmra.mxu3 %vm50_vm0, %v25_v2 }
   0x4   :  { %78 = vmatpush.msra.mxu0 %v21_v0 }
   0x5   :  { %10 = vsyncpa [#allocation3], 0  ;;  %47 = vperm.xlu0 %153, %v29_v3   ;;  %144 = vmatmul.msk.f32.vlgmr.msra.gmra.mxu0 %vm50_vm0, %v22_v4  ;;  %v24_v7 = vld [vmem:[%s255_s1 + $0x10] sm:$0xff]  ;;  %v26_v9 = vld [vmem:[%s256_s2] sm:$0xff]  ;;  %vm103_vm1 = vcmask 261120   ;;  %s135_s15 = sshll.u32 %s259_s5, 4  ;;  %s136_s15 = int_to_ptr.hbm [resolvable:$true] %s135_s15 }
   0x6   :  { %154 = vset.pattern.permute.xlu1 %v182_v5  ;;  %155 = vset.pattern.permute.xlu2 %v182_v5  ;;  %v28_v8 = vld [vmem:[%s256_s2 + $0x10] sm:$0xff]  ;;  %v97_v10 = vld [vmem:[%s258_s4] sm:$0xff]  ;;  %s183_s4 = smov [#allocation2]  }
   0x7   :  { %37 = vperm.xlu1 %154, %v27_v6   ;;  %100 = vperm.xlu2 %155, %v97_v10   ;;  %v96_v27 = vld [vmem:[%s257_s3] sm:$0xff]  ;;  %s133_s12 = sshll.u32 %s183_s4, 4  ;;  %s134_s12 = int_to_ptr.vmem [resolvable:$true] %s133_s12 }
   0xb   :  { %146 = vmatmul.msk.f32.gmra.mxu2 %vm50_vm0, %v24_v7 }
   0xd   :  { %42 = vperm.xlu0 %153, %v28_v8  }
   0xf   :  { %32 = vperm.xlu1 %154, %v26_v9  }
  0x61   :  { %v101_v28 = vpop.permute.xlu2 %100 }
  0x77   :  { %v48_v11 = vpop.permute.xlu0 %47 }
  0x79   :  { %v38_v12 = vpop.permute.xlu1 %37 }
  0x7f   :  { %v43_v17 = vpop.permute.xlu0 %42 }
  0x81   :  { %v33_v18 = vpop.permute.xlu1 %32 }
  0x82   :  { %v80_v19 = vpop.f32.mrf.mxu0 }
  0x83   :  { %v81_v23 = vadd.f32 %v80_v19, %v33_v18 }
  0x85   :  { %v92_v26 = vmax.f32 %v81_v23, 0.0 }
  0x86   :  { %v83_v13 = vpop.f32.mrf.mxu2  ;;  %v89_v14 = vpop.f32.mrf.mxu3 }
  0x87   :  { %v90_v15 = vadd.f32 %v89_v14, %v48_v11  ;;  %v84_v21 = vadd.f32 %v83_v13, %v38_v12 }
  0x89   :  { %v95_v16 = vmax.f32 %v90_v15, 0.0  ;;  %v93_v25 = vmax.f32 %v84_v21, 0.0 }
  0x8b   :  { %119 = vmatpush.msra.mxu1 %v95_v16 }
  0x8e   :  { %v86_v20 = vpop.f32.mrf.mxu2 }
  0x8f   :  { %v87_v22 = vadd.f32 %v86_v20, %v43_v17 }
  0x91   :  { %v94_v24 = vmax.f32 %v87_v22, 0.0 }
  0x93   :  { %120 = vmatpush.msra.mxu1 %v94_v24 }
  0x95   :  { %121 = vmatpush.msra.mxu1 %v93_v25 }
  0x97   :  { %122 = vmatpush.msra.mxu1 %v92_v26 }
  0x98   :  { %148 = vmatmul.msk.f32.vlgmr.msra.gmra.mxu1 %vm103_vm1, %v96_v27 }
 0x115   :  { %v124_v29 = vpop.f32.mrf.mxu1 }
 0x116   :  { %v125_v30 = vadd.f32 %v124_v29, %v101_v28 }
 0x118   :  { %127 = vst [vmem:[#allocation2] sm:$0xff] %v125_v30 }
 0x119   :  { %138 = dma.vmem_to_hbm [thread:$0]  %s134_s12, 128, %s136_s15, [#allocation3]  }
 0x11a   :  { %180 = dma.done.wait [#allocation3], 128  }
 0x11b   :  { %181 = vsyncadd [#allocation3], 4294967168 }
 0x11c   :  { %143 = vsyncpa [#allocation3], 1 }

</bundles_post_ra>
